<compile_context>
chip_gen: v7x
topology: tpu7x:2x2x1
jax: 0.10.0
libtpu: 0.0.40
codegen_flags: <defaults>
</compile_context>

<pallas_src>
import math
import functools

import jax
import jax.numpy as jnp
from jax import lax
from jax.experimental import pallas as pl
from jax.experimental.pallas import tpu as pltpu


def _layer_norm(x, gamma, beta, eps=1e-5):
    # LayerNorm over last dim, population variance (PyTorch semantics). f32 math.
    mean = jnp.mean(x, axis=-1, keepdims=True)
    var = jnp.mean((x - mean) * (x - mean), axis=-1, keepdims=True)
    inv = lax.rsqrt(var + eps)
    return (x - mean) * inv * gamma + beta


def _encoder_kernel(n_heads, head_dim, hpg, q_tile,
                    x_ref,
                    wq_ref, bq_ref, wkv_ref, bkv_ref,
                    wo_ref, bo_ref,
                    g1_ref, be1_ref,
                    w1_ref, bf1_ref, w2_ref, bf2_ref,
                    g2_ref, be2_ref,
                    o_ref,
                    kv_ref, attn_ref):
    qi = pl.program_id(1)
    cdt = wq_ref.dtype                   # compute dtype (bf16)
    D = n_heads * head_dim

    # --- K/V projection: once per batch (qi is the inner, "arbitrary" grid axis) ----
    @pl.when(qi == 0)
    def _():
        xf = x_ref[0].astype(cdt)                                      # (S, D) bf16
        kv = jnp.dot(xf, wkv_ref[...], preferred_element_type=jnp.float32)
        kv_ref[...] = (kv + bkv_ref[...]).astype(kv_ref.dtype)         # (S, 2D) bf16

    # --- query rows (f32): Q projection input + both residuals ----------------------
    row0 = pl.multiple_of(qi * q_tile, q_tile)
    xq = x_ref[0, pl.ds(row0, q_tile), :]                              # (TQ, D) f32

    # Q projection; 1/sqrt(head_dim) already folded into Wq/bq in the wrapper.
    q = jnp.dot(xq.astype(cdt), wq_ref[...], preferred_element_type=jnp.float32)
    q = (q + bq_ref[...]).astype(cdt)                                  # (TQ, D) bf16

    kv = kv_ref[...]                                                   # (S, 2D) bf16

    # --- multi-head attention: lane-dense grouped stores -----------------------------
    n_groups = n_heads // hpg
    gw = hpg * head_dim
    for g in range(n_groups):
        base = g * gw
        ctxs = []
        for j in range(hpg):
            lo = base + j * head_dim
            qh = q[:, lo:lo + head_dim]                                # (TQ, hd)
            kh = kv[:, lo:lo + head_dim]                               # (S, hd)
            vh = kv[:, D + lo:D + lo + head_dim]                       # (S, hd)
            # QK^T without materializing a transpose: contract the last dims.
            s = lax.dot_general(qh, kh, (((1,), (1,)), ((), ())),
                                preferred_element_type=jnp.float32)    # (TQ, S) f32
            s = s - jnp.max(s, axis=-1, keepdims=True)
            p = jnp.exp(s)
            p = p * pl.reciprocal(jnp.sum(p, axis=-1, keepdims=True), approx=True)
            ctxs.append(jnp.dot(p.astype(cdt), vh,
                                preferred_element_type=jnp.float32))   # (TQ, hd)
        blk = ctxs[0] if hpg == 1 else jnp.concatenate(ctxs, axis=1)   # (TQ, gw)
        attn_ref[:, base:base + gw] = blk.astype(attn_ref.dtype)

    # Output projection: one (TQ, D) @ (D, D) matmul on the packed slab.
    attn = jnp.dot(attn_ref[...], wo_ref[...],
                   preferred_element_type=jnp.float32) + bo_ref[...]   # (TQ, D) f32

    # --- residual + first LayerNorm (f32) --------------------------------------------
    h1 = _layer_norm(xq + attn, g1_ref[...], be1_ref[...])

    # --- feed-forward: ReLU fused with the bf16 cast ----------------------------------
    ff = jnp.dot(h1.astype(cdt), w1_ref[...],
                 preferred_element_type=jnp.float32) + bf1_ref[...]
    ff = jnp.maximum(ff, 0.0).astype(cdt)          # only the bf16 copy stays live
    ff = jnp.dot(ff, w2_ref[...],
                 preferred_element_type=jnp.float32) + bf2_ref[...]

    # --- residual + second LayerNorm (f32) --------------------------------------------
    o_ref[0] = _layer_norm(h1 + ff, g2_ref[...], be2_ref[...]).astype(o_ref.dtype)


def _tpu_vmem_capacity_bytes():
    try:
        info = pltpu.get_tpu_info()
        cap = getattr(info, "vmem_capacity_bytes", None)
        if cap:
            return int(cap)
    except Exception:
        pass
    return 128 * 2**20


def _pick_q_tile(S, ff_dim, small_vmem):
    # Bound the per-step (TQ, S) score tile + (TQ, ff_dim) FFN intermediate;
    # prefer larger tiles on v5e/v6e (128 MiB VMEM), smaller on v7x (64 MiB/TC).
    budget = (10 if small_vmem else 24) * 2**20
    cands = (256, 128, 64, 32, 16, 8) if small_vmem else (512, 256, 128, 64, 32, 16, 8)
    for c in cands:
        if S % c == 0 and c * (S + ff_dim) * 4 <= budget:
            return c
    return S


def _heads_per_group(n_heads, head_dim):
    D = n_heads * head_dim
    if head_dim % 128 == 0:
        hpg = 1                              # each head already lane-dense
    elif D <= 128:
        hpg = n_heads                        # whole slab is one lane tile
    elif 128 % head_dim == 0 and D % 128 == 0:
        hpg = 128 // head_dim                # 128-wide, 128-aligned group stores
    else:
        hpg = 1
    if n_heads % hpg != 0:
        hpg = 1
    return hpg


def attention_encoder_layer(x, params, n_heads, *, q_tile=None,
                            compute_dtype=jnp.bfloat16):
    B, S, D = x.shape
    ff_dim = params["w1"].shape[1]
    assert D % n_heads == 0
    head_dim = D // n_heads
    scale = 1.0 / math.sqrt(head_dim)

    vmem_cap = _tpu_vmem_capacity_bytes()
    small_vmem = vmem_cap <= 96 * 2**20      # v7x-class (64 MiB per TensorCore)

    TQ = q_tile if q_tile is not None else _pick_q_tile(S, ff_dim, small_vmem)
    assert S % TQ == 0
    n_q = S // TQ
    hpg = _heads_per_group(n_heads, head_dim)

    f32 = jnp.float32
    # Weights in the (bf16) compute dtype; small vectors (biases, LN affine) in f32.
    # 1/sqrt(head_dim) folded into the Q projection (one-time, constant-size scaling).
    wq_c = (params["wq"] * scale).astype(compute_dtype)
    wkv_c = jnp.concatenate([params["wk"], params["wv"]], axis=1).astype(compute_dtype)
    wo_c = params["wo"].astype(compute_dtype)
    w1_c = params["w1"].astype(compute_dtype)
    w2_c = params["w2"].astype(compute_dtype)
    bq = (params["bq"] * scale).astype(f32)
    bkv = jnp.concatenate([params["bk"], params["bv"]], axis=1).astype(f32)
    bo = params["bo"].astype(f32)
    g1, be1 = params["g1"].astype(f32), params["be1"].astype(f32)
    bf1 = params["bf1"].astype(f32)
    bf2 = params["bf2"].astype(f32)
    g2, be2 = params["g2"].astype(f32), params["be2"].astype(f32)

    kernel = functools.partial(_encoder_kernel, n_heads, head_dim, hpg, TQ)

    # Grid-invariant blocks: constant index map + single-buffered (nothing to pipeline).
    def wspec(shape):
        return pl.BlockSpec(shape, lambda b, qi: (0, 0),
                            pipeline_mode=pl.Buffered(1))

    in_specs = [
        # x: single full-sequence block per batch; constant over qi so it is only
        # re-DMA'd when the batch index changes.  Feeds Q/KV projections + residuals.
        pl.BlockSpec((1, S, D), lambda b, qi: (b, 0, 0)),
        wspec((D, D)), wspec((1, D)),                          # Wq (pre-scaled), bq
        wspec((D, 2 * D)), wspec((1, 2 * D)),                  # W[k|v], b[k|v]
        wspec((D, D)), wspec((1, D)),                          # Wo, bo
        wspec((1, D)), wspec((1, D)),                          # ln1 gamma, beta
        wspec((D, ff_dim)), wspec((1, ff_dim)),                # W1, b1
        wspec((ff_dim, D)), wspec((1, D)),                     # W2, b2
        wspec((1, D)), wspec((1, D)),                          # ln2 gamma, beta
    ]

    # VMEM budget from actual block sizes: weights/biases single-buffered, x/out
    # double-buffered, plus persistent scratch and per-step intermediates.
    cdb = jnp.dtype(compute_dtype).itemsize
    weight_bytes = (wq_c.size + wkv_c.size + wo_c.size + w1_c.size + w2_c.size) * cdb
    vec_bytes = (bq.size + bkv.size + bo.size + g1.size + be1.size +
                 bf1.size + bf2.size + g2.size + be2.size) * 4
    io_bytes = 2 * (S * D * 4) + 2 * (TQ * D * 4)
    scratch_bytes = S * 2 * D * cdb + TQ * D * cdb
    interm_bytes = (TQ * D * 3 + hpg * TQ * S + TQ * ff_dim) * 4
    est = weight_bytes + vec_bytes + io_bytes + scratch_bytes + interm_bytes
    cap = (56 if small_vmem else 100) * 2**20
    vmem_limit = int(min(cap, max(32 * 2**20, int(1.5 * est))))

    # Advisory cost estimate so XLA schedules the surrounding casts/concat well.
    flops = int(2 * B * S * D * D            # Q projection
                + 2 * B * S * D * 2 * D      # fused K|V projection (once per batch)
                + 4 * B * S * S * D          # QK^T + P.V
                + 2 * B * S * D * D          # output projection
                + 4 * B * S * D * ff_dim)    # FFN
    cost = pl.CostEstimate(
        flops=flops,
        transcendentals=int(B * n_heads * S * S),
        bytes_accessed=int(2 * B * S * D * 4 + weight_bytes + vec_bytes))

    return pl.pallas_call(
        kernel,
        out_shape=jax.ShapeDtypeStruct((B, S, D), x.dtype),
        grid_spec=pltpu.PrefetchScalarGridSpec(
            num_scalar_prefetch=0,
            grid=(B, n_q),
            in_specs=in_specs,
            out_specs=pl.BlockSpec((1, TQ, D), lambda b, qi: (b, qi, 0)),
            scratch_shapes=[
                pltpu.VMEM((S, 2 * D), compute_dtype),   # persistent K|V cache
                pltpu.VMEM((TQ, D), compute_dtype),      # per-head context slab
            ],
        ),
        compiler_params=pltpu.CompilerParams(
            # qi must be "arbitrary": the persistent KV cache is (re)built at qi==0,
            # so a core must own the full qi range of each batch it processes.
            dimension_semantics=("parallel", "arbitrary"),
            vmem_limit_bytes=vmem_limit),
        cost_estimate=cost,
    )(x,
      wq_c, bq, wkv_c, bkv,
      wo_c, bo,
      g1, be1,
      w1_c, bf1, w2_c, bf2,
      g2, be2)


def make_params(key, dims, ff_dim):
    ks = jax.random.split(key, 8)
    s = 0.1
    # PyTorch layout: in_proj_weight (3D, D), linear weight (out, in).
    # Stored already transposed so the kernel does x @ W.
    wq = s * jax.random.normal(ks[0], (dims, dims), jnp.float32)
    wk = s * jax.random.normal(ks[1], (dims, dims), jnp.float32)
    wv = s * jax.random.normal(ks[2], (dims, dims), jnp.float32)
    wo = s * jax.random.normal(ks[3], (dims, dims), jnp.float32)
    w1 = s * jax.random.normal(ks[4], (dims, ff_dim), jnp.float32)
    w2 = s * jax.random.normal(ks[5], (ff_dim, dims), jnp.float32)
    return {
        "wq": wq, "wk": wk, "wv": wv,
        "bq": 0.01 * jnp.ones((1, dims), jnp.float32),
        "bk": -0.01 * jnp.ones((1, dims), jnp.float32),
        "bv": 0.02 * jnp.ones((1, dims), jnp.float32),
        "wo": wo, "bo": 0.03 * jnp.ones((1, dims), jnp.float32),
        "g1": jnp.ones((1, dims), jnp.float32),
        "be1": jnp.zeros((1, dims), jnp.float32),
        "w1": w1, "bf1": 0.01 * jnp.ones((1, ff_dim), jnp.float32),
        "w2": w2, "bf2": -0.02 * jnp.ones((1, dims), jnp.float32),
        "g2": jnp.ones((1, dims), jnp.float32),
        "be2": jnp.zeros((1, dims), jnp.float32),
    }


def reference(x, p, n_heads, compute_dtype=jnp.bfloat16):
    # Pure-JAX reference of the PyTorch forward pass. Weights are passed through
    # the same bf16 rounding as the kernel so the comparison is apples-to-apples;
    # activations stay f32 (kernel truncates some to bf16 -> loosened tolerance).
    B, S, D = x.shape
    hd = D // n_heads
    qw = lambda w: w.astype(compute_dtype).astype(jnp.float32)

    def ln(v, g, b, eps=1e-5):
        m = jnp.mean(v, -1, keepdims=True)
        va = jnp.mean((v - m) ** 2, -1, keepdims=True)
        return (v - m) / jnp.sqrt(va + eps) * g + b

    q = x @ qw(p["wq"]) + p["bq"]
    k = x @ qw(p["wk"]) + p["bk"]
    v = x @ qw(p["wv"]) + p["bv"]
    q = q.reshape(B, S, n_heads, hd).transpose(0, 2, 1, 3)
    k = k.reshape(B, S, n_heads, hd).transpose(0, 2, 1, 3)
    v = v.reshape(B, S, n_heads, hd).transpose(0, 2, 1, 3)
    sc = jnp.einsum("bhqd,bhkd->bhqk", q, k) / math.sqrt(hd)
    pr = jax.nn.softmax(sc, axis=-1)
    a = jnp.einsum("bhqk,bhkd->bhqd", pr, v).transpose(0, 2, 1, 3).reshape(B, S, D)
    a = a @ qw(p["wo"]) + p["bo"]
    h1 = ln(x + a, p["g1"], p["be1"])
    ff = jnp.maximum(h1 @ qw(p["w1"]) + p["bf1"], 0.0) @ qw(p["w2"]) + p["bf2"]
    return ln(h1 + ff, p["g2"], p["be2"])


if __name__ == "__main__":
    B, S, D, FF, H = 2, 8, 32, 64, 4
    key = jax.random.PRNGKey(0)
    kx, kp = jax.random.split(key)
    x = jax.random.normal(kx, (B, S, D), jnp.float32)
    params = make_params(kp, D, FF)

    out = attention_encoder_layer(x, params, H)
    out = jax.block_until_ready(out)

    ref = reference(x, params, H)
    assert out.shape == (B, S, D)
    err = float(jnp.max(jnp.abs(out - ref)))
    # Tolerance loosened vs an all-f32 version: bf16 matmul activations, the approx
    # softmax reciprocal, and the scale being folded into Wq before bf16 rounding.
    # Observed error is O(1e-3).
    assert err < 5e-2, f"mismatch vs reference: max abs err = {err}"
    print("KERNEL_OK")
</pallas_src>

<mosaic_0001>
module attributes {stable_mosaic.version = 11 : i64} {
  func.func @_encoder_kernel(%arg0: i32, %arg1: i32, %arg2: memref<1x8x32xf32, #tpu.memory_space<vmem>>, %arg3: memref<32x32xbf16, #tpu.memory_space<vmem>>, %arg4: memref<1x32xf32, #tpu.memory_space<vmem>>, %arg5: memref<32x64xbf16, #tpu.memory_space<vmem>>, %arg6: memref<1x64xf32, #tpu.memory_space<vmem>>, %arg7: memref<32x32xbf16, #tpu.memory_space<vmem>>, %arg8: memref<1x32xf32, #tpu.memory_space<vmem>>, %arg9: memref<1x32xf32, #tpu.memory_space<vmem>>, %arg10: memref<1x32xf32, #tpu.memory_space<vmem>>, %arg11: memref<32x64xbf16, #tpu.memory_space<vmem>>, %arg12: memref<1x64xf32, #tpu.memory_space<vmem>>, %arg13: memref<64x32xbf16, #tpu.memory_space<vmem>>, %arg14: memref<1x32xf32, #tpu.memory_space<vmem>>, %arg15: memref<1x32xf32, #tpu.memory_space<vmem>>, %arg16: memref<1x32xf32, #tpu.memory_space<vmem>>, %arg17: memref<1x8x32xf32, #tpu.memory_space<vmem>>, %arg18: memref<8x64xbf16, #tpu.memory_space<vmem>>, %arg19: memref<8x32xbf16, #tpu.memory_space<vmem>>) attributes {dimension_semantics = [#tpu.dimension_semantics<parallel>, #tpu.dimension_semantics<arbitrary>], iteration_bounds = array<i64: 2, 1>, scalar_prefetch = 0 : i64, scratch_operands = 2 : i64, tpu.core_type = #tpu.core_type<tc>, window_params = [{transform_indices = @transform_0, window_bounds = array<i64: 1, 8, 32>}, {pipeline_mode = #tpu.pipeline_mode<synchronous>, transform_indices = @transform_1, window_bounds = array<i64: 32, 32>}, {pipeline_mode = #tpu.pipeline_mode<synchronous>, transform_indices = @transform_2, window_bounds = array<i64: 1, 32>}, {pipeline_mode = #tpu.pipeline_mode<synchronous>, transform_indices = @transform_3, window_bounds = array<i64: 32, 64>}, {pipeline_mode = #tpu.pipeline_mode<synchronous>, transform_indices = @transform_4, window_bounds = array<i64: 1, 64>}, {pipeline_mode = #tpu.pipeline_mode<synchronous>, transform_indices = @transform_5, window_bounds = array<i64: 32, 32>}, {pipeline_mode = #tpu.pipeline_mode<synchronous>, transform_indices = @transform_6, window_bounds = array<i64: 1, 32>}, {pipeline_mode = #tpu.pipeline_mode<synchronous>, transform_indices = @transform_7, window_bounds = array<i64: 1, 32>}, {pipeline_mode = #tpu.pipeline_mode<synchronous>, transform_indices = @transform_8, window_bounds = array<i64: 1, 32>}, {pipeline_mode = #tpu.pipeline_mode<synchronous>, transform_indices = @transform_9, window_bounds = array<i64: 32, 64>}, {pipeline_mode = #tpu.pipeline_mode<synchronous>, transform_indices = @transform_10, window_bounds = array<i64: 1, 64>}, {pipeline_mode = #tpu.pipeline_mode<synchronous>, transform_indices = @transform_11, window_bounds = array<i64: 64, 32>}, {pipeline_mode = #tpu.pipeline_mode<synchronous>, transform_indices = @transform_12, window_bounds = array<i64: 1, 32>}, {pipeline_mode = #tpu.pipeline_mode<synchronous>, transform_indices = @transform_13, window_bounds = array<i64: 1, 32>}, {pipeline_mode = #tpu.pipeline_mode<synchronous>, transform_indices = @transform_14, window_bounds = array<i64: 1, 32>}, {transform_indices = @transform_15, window_bounds = array<i64: 1, 8, 32>}]} {
    %c0_i32 = arith.constant 0 : i32
    %0 = arith.cmpi eq, %arg1, %c0_i32 : i32
    %1 = arith.extui %0 : i1 to i32
    %c0_i32_0 = arith.constant 0 : i32
    %2 = arith.cmpi ne, %1, %c0_i32_0 : i32
    scf.if %2 {
      %c0_65 = arith.constant 0 : index
      %c0_66 = arith.constant 0 : index
      %c0_67 = arith.constant 0 : index
      %160 = vector.load %arg2[%c0_65, %c0_66, %c0_67] : memref<1x8x32xf32, #tpu.memory_space<vmem>>, vector<1x8x32xf32>
      %161 = vector.shape_cast %160 : vector<1x8x32xf32> to vector<8x32xf32>
      %162 = arith.truncf %161 : vector<8x32xf32> to vector<8x32xbf16>
      %c0_68 = arith.constant 0 : index
      %c0_69 = arith.constant 0 : index
      %163 = vector.load %arg5[%c0_68, %c0_69] : memref<32x64xbf16, #tpu.memory_space<vmem>>, vector<32x64xbf16>
      %cst_70 = arith.constant dense<0.000000e+00> : vector<8x64xf32>
      %164 = tpu.matmul %162, %163, %cst_70 {dimension_numbers = #tpu.dot_dimension_numbers<[1], [0], [0], [1], [0, 0, 1, 1], [], []>} : vector<8x32xbf16>, vector<32x64xbf16>, vector<8x64xf32> -> vector<8x64xf32>
      %c0_71 = arith.constant 0 : index
      %c0_72 = arith.constant 0 : index
      %165 = vector.load %arg6[%c0_71, %c0_72] : memref<1x64xf32, #tpu.memory_space<vmem>>, vector<1x64xf32>
      %166 = vector.broadcast %165 : vector<1x64xf32> to vector<8x64xf32>
      %167 = arith.addf %164, %166 : vector<8x64xf32>
      %168 = arith.truncf %167 : vector<8x64xf32> to vector<8x64xbf16>
      %c0_73 = arith.constant 0 : index
      %c0_74 = arith.constant 0 : index
      %169 = vector.load %arg18[%c0_73, %c0_74] : memref<8x64xbf16, #tpu.memory_space<vmem>>, vector<8x64xbf16>
      tpu.vector_store %arg18[%c0_73, %c0_74], %168 {strides = array<i32>} : memref<8x64xbf16, #tpu.memory_space<vmem>>, vector<8x64xbf16>,
    } else {
    }
    %c8_i32 = arith.constant 8 : i32
    %3 = arith.muli %arg1, %c8_i32 : i32
    %4 = tpu.assume_multiple %3, 8 : i32
    %c0 = arith.constant 0 : index
    %5 = arith.index_cast %4 : i32 to index
    %c0_1 = arith.constant 0 : index
    %6 = vector.load %arg2[%c0, %5, %c0_1] : memref<1x8x32xf32, #tpu.memory_space<vmem>>, vector<1x8x32xf32>
    %7 = vector.shape_cast %6 : vector<1x8x32xf32> to vector<8x32xf32>
    %8 = arith.truncf %7 : vector<8x32xf32> to vector<8x32xbf16>
    %c0_2 = arith.constant 0 : index
    %c0_3 = arith.constant 0 : index
    %9 = vector.load %arg3[%c0_2, %c0_3] : memref<32x32xbf16, #tpu.memory_space<vmem>>, vector<32x32xbf16>
    %cst = arith.constant dense<0.000000e+00> : vector<8x32xf32>
    %10 = tpu.matmul %8, %9, %cst {dimension_numbers = #tpu.dot_dimension_numbers<[1], [0], [0], [1], [0, 0, 1, 1], [], []>} : vector<8x32xbf16>, vector<32x32xbf16>, vector<8x32xf32> -> vector<8x32xf32>
    %c0_4 = arith.constant 0 : index
    %c0_5 = arith.constant 0 : index
    %11 = vector.load %arg4[%c0_4, %c0_5] : memref<1x32xf32, #tpu.memory_space<vmem>>, vector<1x32xf32>
    %12 = vector.broadcast %11 : vector<1x32xf32> to vector<8x32xf32>
    %13 = arith.addf %10, %12 : vector<8x32xf32>
    %14 = arith.truncf %13 : vector<8x32xf32> to vector<8x32xbf16>
    %c0_6 = arith.constant 0 : index
    %c0_7 = arith.constant 0 : index
    %15 = vector.load %arg18[%c0_6, %c0_7] : memref<8x64xbf16, #tpu.memory_space<vmem>>, vector<8x64xbf16>
    %16 = vector.extract_strided_slice %14 {offsets = [0, 0], sizes = [8, 8], strides = [1, 1]} : vector<8x32xbf16> to vector<8x8xbf16>
    %17 = vector.extract_strided_slice %15 {offsets = [0, 0], sizes = [8, 8], strides = [1, 1]} : vector<8x64xbf16> to vector<8x8xbf16>
    %18 = vector.extract_strided_slice %15 {offsets = [0, 32], sizes = [8, 8], strides = [1, 1]} : vector<8x64xbf16> to vector<8x8xbf16>
    %cst_8 = arith.constant dense<0.000000e+00> : vector<8x8xf32>
    %19 = tpu.matmul %16, %17, %cst_8 {dimension_numbers = #tpu.dot_dimension_numbers<[1], [1], [0], [0], [0, 0, 1, 0], [], []>} : vector<8x8xbf16>, vector<8x8xbf16>, vector<8x8xf32> -> vector<8x8xf32>
    %cst_9 = arith.constant dense<0xFF800000> : vector<8xf32>
    %20 = vector.multi_reduction <maximumf>, %19, %cst_9 [1] : vector<8x8xf32> to vector<8xf32>
    %21 = vector.shape_cast %20 : vector<8xf32> to vector<8x1xf32>
    %22 = vector.broadcast %21 : vector<8x1xf32> to vector<8x8xf32>
    %23 = arith.subf %19, %22 : vector<8x8xf32>
    %24 = math.exp %23 : vector<8x8xf32>
    %cst_10 = arith.constant dense<0.000000e+00> : vector<8xf32>
    %25 = vector.multi_reduction <add>, %24, %cst_10 [1] : vector<8x8xf32> to vector<8xf32>
    %26 = vector.shape_cast %25 : vector<8xf32> to vector<8x1xf32>
    %27 = tpu.reciprocal %26 {approx = true} : vector<8x1xf32> -> vector<8x1xf32>
    %28 = vector.broadcast %27 : vector<8x1xf32> to vector<8x8xf32>
    %29 = arith.mulf %24, %28 : vector<8x8xf32>
    %30 = arith.truncf %29 : vector<8x8xf32> to vector<8x8xbf16>
    %cst_11 = arith.constant dense<0.000000e+00> : vector<8x8xf32>
    %31 = tpu.matmul %30, %18, %cst_11 {dimension_numbers = #tpu.dot_dimension_numbers<[1], [0], [0], [1], [0, 0, 1, 1], [], []>} : vector<8x8xbf16>, vector<8x8xbf16>, vector<8x8xf32> -> vector<8x8xf32>
    %32 = vector.extract_strided_slice %14 {offsets = [0, 8], sizes = [8, 8], strides = [1, 1]} : vector<8x32xbf16> to vector<8x8xbf16>
    %33 = vector.extract_strided_slice %15 {offsets = [0, 8], sizes = [8, 8], strides = [1, 1]} : vector<8x64xbf16> to vector<8x8xbf16>
    %34 = vector.extract_strided_slice %15 {offsets = [0, 40], sizes = [8, 8], strides = [1, 1]} : vector<8x64xbf16> to vector<8x8xbf16>
    %cst_12 = arith.constant dense<0.000000e+00> : vector<8x8xf32>
    %35 = tpu.matmul %32, %33, %cst_12 {dimension_numbers = #tpu.dot_dimension_numbers<[1], [1], [0], [0], [0, 0, 1, 0], [], []>} : vector<8x8xbf16>, vector<8x8xbf16>, vector<8x8xf32> -> vector<8x8xf32>
    %cst_13 = arith.constant dense<0xFF800000> : vector<8xf32>
    %36 = vector.multi_reduction <maximumf>, %35, %cst_13 [1] : vector<8x8xf32> to vector<8xf32>
    %37 = vector.shape_cast %36 : vector<8xf32> to vector<8x1xf32>
    %38 = vector.broadcast %37 : vector<8x1xf32> to vector<8x8xf32>
    %39 = arith.subf %35, %38 : vector<8x8xf32>
    %40 = math.exp %39 : vector<8x8xf32>
    %cst_14 = arith.constant dense<0.000000e+00> : vector<8xf32>
    %41 = vector.multi_reduction <add>, %40, %cst_14 [1] : vector<8x8xf32> to vector<8xf32>
    %42 = vector.shape_cast %41 : vector<8xf32> to vector<8x1xf32>
    %43 = tpu.reciprocal %42 {approx = true} : vector<8x1xf32> -> vector<8x1xf32>
    %44 = vector.broadcast %43 : vector<8x1xf32> to vector<8x8xf32>
    %45 = arith.mulf %40, %44 : vector<8x8xf32>
    %46 = arith.truncf %45 : vector<8x8xf32> to vector<8x8xbf16>
    %cst_15 = arith.constant dense<0.000000e+00> : vector<8x8xf32>
    %47 = tpu.matmul %46, %34, %cst_15 {dimension_numbers = #tpu.dot_dimension_numbers<[1], [0], [0], [1], [0, 0, 1, 1], [], []>} : vector<8x8xbf16>, vector<8x8xbf16>, vector<8x8xf32> -> vector<8x8xf32>
    %48 = vector.extract_strided_slice %14 {offsets = [0, 16], sizes = [8, 8], strides = [1, 1]} : vector<8x32xbf16> to vector<8x8xbf16>
    %49 = vector.extract_strided_slice %15 {offsets = [0, 16], sizes = [8, 8], strides = [1, 1]} : vector<8x64xbf16> to vector<8x8xbf16>
    %50 = vector.extract_strided_slice %15 {offsets = [0, 48], sizes = [8, 8], strides = [1, 1]} : vector<8x64xbf16> to vector<8x8xbf16>
    %cst_16 = arith.constant dense<0.000000e+00> : vector<8x8xf32>
    %51 = tpu.matmul %48, %49, %cst_16 {dimension_numbers = #tpu.dot_dimension_numbers<[1], [1], [0], [0], [0, 0, 1, 0], [], []>} : vector<8x8xbf16>, vector<8x8xbf16>, vector<8x8xf32> -> vector<8x8xf32>
    %cst_17 = arith.constant dense<0xFF800000> : vector<8xf32>
    %52 = vector.multi_reduction <maximumf>, %51, %cst_17 [1] : vector<8x8xf32> to vector<8xf32>
    %53 = vector.shape_cast %52 : vector<8xf32> to vector<8x1xf32>
    %54 = vector.broadcast %53 : vector<8x1xf32> to vector<8x8xf32>
    %55 = arith.subf %51, %54 : vector<8x8xf32>
    %56 = math.exp %55 : vector<8x8xf32>
    %cst_18 = arith.constant dense<0.000000e+00> : vector<8xf32>
    %57 = vector.multi_reduction <add>, %56, %cst_18 [1] : vector<8x8xf32> to vector<8xf32>
    %58 = vector.shape_cast %57 : vector<8xf32> to vector<8x1xf32>
    %59 = tpu.reciprocal %58 {approx = true} : vector<8x1xf32> -> vector<8x1xf32>
    %60 = vector.broadcast %59 : vector<8x1xf32> to vector<8x8xf32>
    %61 = arith.mulf %56, %60 : vector<8x8xf32>
    %62 = arith.truncf %61 : vector<8x8xf32> to vector<8x8xbf16>
    %cst_19 = arith.constant dense<0.000000e+00> : vector<8x8xf32>
    %63 = tpu.matmul %62, %50, %cst_19 {dimension_numbers = #tpu.dot_dimension_numbers<[1], [0], [0], [1], [0, 0, 1, 1], [], []>} : vector<8x8xbf16>, vector<8x8xbf16>, vector<8x8xf32> -> vector<8x8xf32>
    %64 = vector.extract_strided_slice %14 {offsets = [0, 24], sizes = [8, 8], strides = [1, 1]} : vector<8x32xbf16> to vector<8x8xbf16>
    %65 = vector.extract_strided_slice %15 {offsets = [0, 24], sizes = [8, 8], strides = [1, 1]} : vector<8x64xbf16> to vector<8x8xbf16>
    %66 = vector.extract_strided_slice %15 {offsets = [0, 56], sizes = [8, 8], strides = [1, 1]} : vector<8x64xbf16> to vector<8x8xbf16>
    %cst_20 = arith.constant dense<0.000000e+00> : vector<8x8xf32>
    %67 = tpu.matmul %64, %65, %cst_20 {dimension_numbers = #tpu.dot_dimension_numbers<[1], [1], [0], [0], [0, 0, 1, 0], [], []>} : vector<8x8xbf16>, vector<8x8xbf16>, vector<8x8xf32> -> vector<8x8xf32>
    %cst_21 = arith.constant dense<0xFF800000> : vector<8xf32>
    %68 = vector.multi_reduction <maximumf>, %67, %cst_21 [1] : vector<8x8xf32> to vector<8xf32>
    %69 = vector.shape_cast %68 : vector<8xf32> to vector<8x1xf32>
    %70 = vector.broadcast %69 : vector<8x1xf32> to vector<8x8xf32>
    %71 = arith.subf %67, %70 : vector<8x8xf32>
    %72 = math.exp %71 : vector<8x8xf32>
    %cst_22 = arith.constant dense<0.000000e+00> : vector<8xf32>
    %73 = vector.multi_reduction <add>, %72, %cst_22 [1] : vector<8x8xf32> to vector<8xf32>
    %74 = vector.shape_cast %73 : vector<8xf32> to vector<8x1xf32>
    %75 = tpu.reciprocal %74 {approx = true} : vector<8x1xf32> -> vector<8x1xf32>
    %76 = vector.broadcast %75 : vector<8x1xf32> to vector<8x8xf32>
    %77 = arith.mulf %72, %76 : vector<8x8xf32>
    %78 = arith.truncf %77 : vector<8x8xf32> to vector<8x8xbf16>
    %cst_23 = arith.constant dense<0.000000e+00> : vector<8x8xf32>
    %79 = tpu.matmul %78, %66, %cst_23 {dimension_numbers = #tpu.dot_dimension_numbers<[1], [0], [0], [1], [0, 0, 1, 1], [], []>} : vector<8x8xbf16>, vector<8x8xbf16>, vector<8x8xf32> -> vector<8x8xf32>
    %80 = tpu.concatenate %31, %47, %63, %79 in 1 : vector<8x8xf32>, vector<8x8xf32>, vector<8x8xf32>, vector<8x8xf32> -> vector<8x32xf32>
    %81 = arith.truncf %80 : vector<8x32xf32> to vector<8x32xbf16>
    %c0_24 = arith.constant 0 : index
    %c0_25 = arith.constant 0 : index
    %82 = vector.load %arg19[%c0_24, %c0_25] : memref<8x32xbf16, #tpu.memory_space<vmem>>, vector<8x32xbf16>
    tpu.vector_store %arg19[%c0_24, %c0_25], %81 {strides = array<i32>} : memref<8x32xbf16, #tpu.memory_space<vmem>>, vector<8x32xbf16>,
    %c0_26 = arith.constant 0 : index
    %c0_27 = arith.constant 0 : index
    %83 = vector.load %arg19[%c0_26, %c0_27] : memref<8x32xbf16, #tpu.memory_space<vmem>>, vector<8x32xbf16>
    %c0_28 = arith.constant 0 : index
    %c0_29 = arith.constant 0 : index
    %84 = vector.load %arg7[%c0_28, %c0_29] : memref<32x32xbf16, #tpu.memory_space<vmem>>, vector<32x32xbf16>
    %cst_30 = arith.constant dense<0.000000e+00> : vector<8x32xf32>
    %85 = tpu.matmul %83, %84, %cst_30 {dimension_numbers = #tpu.dot_dimension_numbers<[1], [0], [0], [1], [0, 0, 1, 1], [], []>} : vector<8x32xbf16>, vector<32x32xbf16>, vector<8x32xf32> -> vector<8x32xf32>
    %c0_31 = arith.constant 0 : index
    %c0_32 = arith.constant 0 : index
    %86 = vector.load %arg8[%c0_31, %c0_32] : memref<1x32xf32, #tpu.memory_space<vmem>>, vector<1x32xf32>
    %87 = vector.broadcast %86 : vector<1x32xf32> to vector<8x32xf32>
    %88 = arith.addf %85, %87 : vector<8x32xf32>
    %89 = arith.addf %7, %88 : vector<8x32xf32>
    %c0_33 = arith.constant 0 : index
    %c0_34 = arith.constant 0 : index
    %90 = vector.load %arg9[%c0_33, %c0_34] : memref<1x32xf32, #tpu.memory_space<vmem>>, vector<1x32xf32>
    %c0_35 = arith.constant 0 : index
    %c0_36 = arith.constant 0 : index
    %91 = vector.load %arg10[%c0_35, %c0_36] : memref<1x32xf32, #tpu.memory_space<vmem>>, vector<1x32xf32>
    %cst_37 = arith.constant dense<0.000000e+00> : vector<8xf32>
    %92 = vector.multi_reduction <add>, %89, %cst_37 [1] : vector<8x32xf32> to vector<8xf32>
    %93 = vector.shape_cast %92 : vector<8xf32> to vector<8x1xf32>
    %cst_38 = arith.constant 3.200000e+01 : f32
    %94 = vector.broadcast %cst_38 : f32 to vector<8x1xf32>
    %95 = arith.divf %93, %94 : vector<8x1xf32>
    %96 = vector.broadcast %95 : vector<8x1xf32> to vector<8x32xf32>
    %97 = arith.subf %89, %96 : vector<8x32xf32>
    %98 = vector.broadcast %95 : vector<8x1xf32> to vector<8x32xf32>
    %99 = arith.subf %89, %98 : vector<8x32xf32>
    %100 = arith.mulf %97, %99 : vector<8x32xf32>
    %cst_39 = arith.constant dense<0.000000e+00> : vector<8xf32>
    %101 = vector.multi_reduction <add>, %100, %cst_39 [1] : vector<8x32xf32> to vector<8xf32>
    %102 = vector.shape_cast %101 : vector<8xf32> to vector<8x1xf32>
    %cst_40 = arith.constant 3.200000e+01 : f32
    %103 = vector.broadcast %cst_40 : f32 to vector<8x1xf32>
    %104 = arith.divf %102, %103 : vector<8x1xf32>
    %cst_41 = arith.constant 9.99999974E-6 : f32
    %105 = vector.broadcast %cst_41 : f32 to vector<8x1xf32>
    %106 = arith.addf %104, %105 : vector<8x1xf32>
    %107 = math.rsqrt %106 : vector<8x1xf32>
    %108 = vector.broadcast %95 : vector<8x1xf32> to vector<8x32xf32>
    %109 = arith.subf %89, %108 : vector<8x32xf32>
    %110 = vector.broadcast %107 : vector<8x1xf32> to vector<8x32xf32>
    %111 = arith.mulf %109, %110 : vector<8x32xf32>
    %112 = vector.broadcast %90 : vector<1x32xf32> to vector<8x32xf32>
    %113 = arith.mulf %111, %112 : vector<8x32xf32>
    %114 = vector.broadcast %91 : vector<1x32xf32> to vector<8x32xf32>
    %115 = arith.addf %113, %114 : vector<8x32xf32>
    %116 = arith.truncf %115 : vector<8x32xf32> to vector<8x32xbf16>
    %c0_42 = arith.constant 0 : index
    %c0_43 = arith.constant 0 : index
    %117 = vector.load %arg11[%c0_42, %c0_43] : memref<32x64xbf16, #tpu.memory_space<vmem>>, vector<32x64xbf16>
    %cst_44 = arith.constant dense<0.000000e+00> : vector<8x64xf32>
    %118 = tpu.matmul %116, %117, %cst_44 {dimension_numbers = #tpu.dot_dimension_numbers<[1], [0], [0], [1], [0, 0, 1, 1], [], []>} : vector<8x32xbf16>, vector<32x64xbf16>, vector<8x64xf32> -> vector<8x64xf32>
    %c0_45 = arith.constant 0 : index
    %c0_46 = arith.constant 0 : index
    %119 = vector.load %arg12[%c0_45, %c0_46] : memref<1x64xf32, #tpu.memory_space<vmem>>, vector<1x64xf32>
    %120 = vector.broadcast %119 : vector<1x64xf32> to vector<8x64xf32>
    %121 = arith.addf %118, %120 : vector<8x64xf32>
    %cst_47 = arith.constant 0.000000e+00 : f32
    %122 = vector.broadcast %cst_47 : f32 to vector<8x64xf32>
    %123 = arith.maximumf %121, %122 : vector<8x64xf32>
    %124 = arith.truncf %123 : vector<8x64xf32> to vector<8x64xbf16>
    %c0_48 = arith.constant 0 : index
    %c0_49 = arith.constant 0 : index
    %125 = vector.load %arg13[%c0_48, %c0_49] : memref<64x32xbf16, #tpu.memory_space<vmem>>, vector<64x32xbf16>
    %cst_50 = arith.constant dense<0.000000e+00> : vector<8x32xf32>
    %126 = tpu.matmul %124, %125, %cst_50 {dimension_numbers = #tpu.dot_dimension_numbers<[1], [0], [0], [1], [0, 0, 1, 1], [], []>} : vector<8x64xbf16>, vector<64x32xbf16>, vector<8x32xf32> -> vector<8x32xf32>
    %c0_51 = arith.constant 0 : index
    %c0_52 = arith.constant 0 : index
    %127 = vector.load %arg14[%c0_51, %c0_52] : memref<1x32xf32, #tpu.memory_space<vmem>>, vector<1x32xf32>
    %128 = vector.broadcast %127 : vector<1x32xf32> to vector<8x32xf32>
    %129 = arith.addf %126, %128 : vector<8x32xf32>
    %130 = arith.addf %115, %129 : vector<8x32xf32>
    %c0_53 = arith.constant 0 : index
    %c0_54 = arith.constant 0 : index
    %131 = vector.load %arg15[%c0_53, %c0_54] : memref<1x32xf32, #tpu.memory_space<vmem>>, vector<1x32xf32>
    %c0_55 = arith.constant 0 : index
    %c0_56 = arith.constant 0 : index
    %132 = vector.load %arg16[%c0_55, %c0_56] : memref<1x32xf32, #tpu.memory_space<vmem>>, vector<1x32xf32>
    %cst_57 = arith.constant dense<0.000000e+00> : vector<8xf32>
    %133 = vector.multi_reduction <add>, %130, %cst_57 [1] : vector<8x32xf32> to vector<8xf32>
    %134 = vector.shape_cast %133 : vector<8xf32> to vector<8x1xf32>
    %cst_58 = arith.constant 3.200000e+01 : f32
    %135 = vector.broadcast %cst_58 : f32 to vector<8x1xf32>
    %136 = arith.divf %134, %135 : vector<8x1xf32>
    %137 = vector.broadcast %136 : vector<8x1xf32> to vector<8x32xf32>
    %138 = arith.subf %130, %137 : vector<8x32xf32>
    %139 = vector.broadcast %136 : vector<8x1xf32> to vector<8x32xf32>
    %140 = arith.subf %130, %139 : vector<8x32xf32>
    %141 = arith.mulf %138, %140 : vector<8x32xf32>
    %cst_59 = arith.constant dense<0.000000e+00> : vector<8xf32>
    %142 = vector.multi_reduction <add>, %141, %cst_59 [1] : vector<8x32xf32> to vector<8xf32>
    %143 = vector.shape_cast %142 : vector<8xf32> to vector<8x1xf32>
    %cst_60 = arith.constant 3.200000e+01 : f32
    %144 = vector.broadcast %cst_60 : f32 to vector<8x1xf32>
    %145 = arith.divf %143, %144 : vector<8x1xf32>
    %cst_61 = arith.constant 9.99999974E-6 : f32
    %146 = vector.broadcast %cst_61 : f32 to vector<8x1xf32>
    %147 = arith.addf %145, %146 : vector<8x1xf32>
    %148 = math.rsqrt %147 : vector<8x1xf32>
    %149 = vector.broadcast %136 : vector<8x1xf32> to vector<8x32xf32>
    %150 = arith.subf %130, %149 : vector<8x32xf32>
    %151 = vector.broadcast %148 : vector<8x1xf32> to vector<8x32xf32>
    %152 = arith.mulf %150, %151 : vector<8x32xf32>
    %153 = vector.broadcast %131 : vector<1x32xf32> to vector<8x32xf32>
    %154 = arith.mulf %152, %153 : vector<8x32xf32>
    %155 = vector.broadcast %132 : vector<1x32xf32> to vector<8x32xf32>
    %156 = arith.addf %154, %155 : vector<8x32xf32>
    %c0_62 = arith.constant 0 : index
    %c0_63 = arith.constant 0 : index
    %c0_64 = arith.constant 0 : index
    %157 = vector.load %arg17[%c0_62, %c0_63, %c0_64] : memref<1x8x32xf32, #tpu.memory_space<vmem>>, vector<1x8x32xf32>
    %158 = vector.shape_cast %157 : vector<1x8x32xf32> to vector<8x32xf32>
    %159 = vector.shape_cast %156 : vector<8x32xf32> to vector<1x8x32xf32>
    tpu.vector_store %arg17[%c0_62, %c0_63, %c0_64], %159 {strides = array<i32>} : memref<1x8x32xf32, #tpu.memory_space<vmem>>, vector<1x8x32xf32>,
    return
  }
  func.func @transform_0(%arg0: i32, %arg1: i32) -> (i32, i32, i32) {
    %c0_i32 = arith.constant 0 : i32
    %c0_i32_0 = arith.constant 0 : i32
    %c0_i32_1 = arith.constant 0 : i32
    return %arg0, %c0_i32, %c0_i32_0 : i32, i32, i32
  }
  func.func @transform_1(%arg0: i32, %arg1: i32) -> (i32, i32) {
    %c0_i32 = arith.constant 0 : i32
    %c0_i32_0 = arith.constant 0 : i32
    %c0_i32_1 = arith.constant 0 : i32
    return %c0_i32, %c0_i32_0 : i32, i32
  }
  func.func @transform_2(%arg0: i32, %arg1: i32) -> (i32, i32) {
    %c0_i32 = arith.constant 0 : i32
    %c0_i32_0 = arith.constant 0 : i32
    %c0_i32_1 = arith.constant 0 : i32
    return %c0_i32, %c0_i32_0 : i32, i32
  }
  func.func @transform_3(%arg0: i32, %arg1: i32) -> (i32, i32) {
    %c0_i32 = arith.constant 0 : i32
    %c0_i32_0 = arith.constant 0 : i32
    %c0_i32_1 = arith.constant 0 : i32
    return %c0_i32, %c0_i32_0 : i32, i32
  }
  func.func @transform_4(%arg0: i32, %arg1: i32) -> (i32, i32) {
    %c0_i32 = arith.constant 0 : i32
    %c0_i32_0 = arith.constant 0 : i32
    %c0_i32_1 = arith.constant 0 : i32
    return %c0_i32, %c0_i32_0 : i32, i32
  }
  func.func @transform_5(%arg0: i32, %arg1: i32) -> (i32, i32) {
    %c0_i32 = arith.constant 0 : i32
    %c0_i32_0 = arith.constant 0 : i32
    %c0_i32_1 = arith.constant 0 : i32
    return %c0_i32, %c0_i32_0 : i32, i32
  }
  func.func @transform_6(%arg0: i32, %arg1: i32) -> (i32, i32) {
    %c0_i32 = arith.constant 0 : i32
    %c0_i32_0 = arith.constant 0 : i32
    %c0_i32_1 = arith.constant 0 : i32
    return %c0_i32, %c0_i32_0 : i32, i32
  }
  func.func @transform_7(%arg0: i32, %arg1: i32) -> (i32, i32) {
    %c0_i32 = arith.constant 0 : i32
    %c0_i32_0 = arith.constant 0 : i32
    %c0_i32_1 = arith.constant 0 : i32
    return %c0_i32, %c0_i32_0 : i32, i32
  }
  func.func @transform_8(%arg0: i32, %arg1: i32) -> (i32, i32) {
    %c0_i32 = arith.constant 0 : i32
    %c0_i32_0 = arith.constant 0 : i32
    %c0_i32_1 = arith.constant 0 : i32
    return %c0_i32, %c0_i32_0 : i32, i32
  }
  func.func @transform_9(%arg0: i32, %arg1: i32) -> (i32, i32) {
    %c0_i32 = arith.constant 0 : i32
    %c0_i32_0 = arith.constant 0 : i32
    %c0_i32_1 = arith.constant 0 : i32
    return %c0_i32, %c0_i32_0 : i32, i32
  }
  func.func @transform_10(%arg0: i32, %arg1: i32) -> (i32, i32) {
    %c0_i32 = arith.constant 0 : i32
    %c0_i32_0 = arith.constant 0 : i32
    %c0_i32_1 = arith.constant 0 : i32
    return %c0_i32, %c0_i32_0 : i32, i32
  }
  func.func @transform_11(%arg0: i32, %arg1: i32) -> (i32, i32) {
    %c0_i32 = arith.constant 0 : i32
    %c0_i32_0 = arith.constant 0 : i32
    %c0_i32_1 = arith.constant 0 : i32
    return %c0_i32, %c0_i32_0 : i32, i32
  }
  func.func @transform_12(%arg0: i32, %arg1: i32) -> (i32, i32) {
    %c0_i32 = arith.constant 0 : i32
    %c0_i32_0 = arith.constant 0 : i32
    %c0_i32_1 = arith.constant 0 : i32
    return %c0_i32, %c0_i32_0 : i32, i32
  }
  func.func @transform_13(%arg0: i32, %arg1: i32) -> (i32, i32) {
    %c0_i32 = arith.constant 0 : i32
    %c0_i32_0 = arith.constant 0 : i32
    %c0_i32_1 = arith.constant 0 : i32
    return %c0_i32, %c0_i32_0 : i32, i32
  }
  func.func @transform_14(%arg0: i32, %arg1: i32) -> (i32, i32) {
    %c0_i32 = arith.constant 0 : i32
    %c0_i32_0 = arith.constant 0 : i32
    %c0_i32_1 = arith.constant 0 : i32
    return %c0_i32, %c0_i32_0 : i32, i32
  }
  func.func @transform_15(%arg0: i32, %arg1: i32) -> (i32, i32, i32) {
    %c0_i32 = arith.constant 0 : i32
    %c0_i32_0 = arith.constant 0 : i32
    return %arg0, %arg1, %c0_i32 : i32, i32, i32
  }
}

</mosaic_0001>

<bundles_post_ra>
// kernel: tpu_custom_call.1
= control target key start
LH: loop header
LB: loop body
LE: loop exit
PB: predicated region body
PF: predicated region fallthrough
CT: control target
= control target key end

     0   :  { %s2570_s0 = inlined_call_operand.vmem [shape: f32[2,8,32], index: 0, kind: input, shape index: {}]   ;;  %s2571_s1 = inlined_call_operand.vmem [shape: bf16[32,32], index: 1, kind: input, shape index: {}]   ;;  %s2572_s2 = inlined_call_operand.vmem [shape: f32[1,32], index: 2, kind: input, shape index: {}]   ;;  %s2573_s3 = inlined_call_operand.vmem [shape: bf16[32,64], index: 3, kind: input, shape index: {}]   ;;  %s2574_s4 = inlined_call_operand.vmem [shape: f32[1,64], index: 4, kind: input, shape index: {}]   ;;  %s2575_s5 = inlined_call_operand.hbm [shape: bf16[32,32], index: 5, kind: input, shape index: {}]   ;;  %s2576_s6 = inlined_call_operand.hbm [shape: f32[1,32], index: 6, kind: input, shape index: {}]   ;;  %s2577_s7 = inlined_call_operand.hbm [shape: f32[1,32], index: 7, kind: input, shape index: {}]   ;;  %s2578_s8 = inlined_call_operand.hbm [shape: f32[1,32], index: 8, kind: input, shape index: {}]   ;;  %s2579_s9 = inlined_call_operand.vmem [shape: bf16[32,64], index: 9, kind: input, shape index: {}]   ;;  %s2580_s10 = inlined_call_operand.vmem [shape: f32[1,64], index: 10, kind: input, shape index: {}]   ;;  %s2581_s11 = inlined_call_operand.vmem [shape: bf16[64,32], index: 11, kind: input, shape index: {}]   ;;  %s2582_s12 = inlined_call_operand.vmem [shape: f32[1,32], index: 12, kind: input, shape index: {}]   ;;  %s2583_s13 = inlined_call_operand.vmem [shape: f32[1,32], index: 13, kind: input, shape index: {}]   ;;  %s2584_s14 = inlined_call_operand.vmem [shape: f32[1,32], index: 14, kind: input, shape index: {}]   ;;  %s2585_s15 = inlined_call_operand.hbm [shape: f32[2,8,32], index: 15, kind: output, shape index: {}]  }
   0x1   :  { %2601 = sst [smem:[#allocation26_spill]] %s2576_s6 }
   0x2   :  { %2602 = sst [smem:[#allocation27_spill]] %s2580_s10 }
   0x3   :  { %2603 = sst [smem:[#allocation28_spill]] %s2582_s12 }
   0x4   :  { %2604 = sst [smem:[#allocation29_spill]] %s2583_s13 }
   0x5   :  { %2605 = sst [smem:[#allocation30_spill]] %s2584_s14 }
   0x6   :  { %2606 = sst [smem:[#allocation31_spill]] %s2585_s15 }
   0x7   :  { %20 = vsyncpa [#allocation5], 0 }
   0x8   :  { %21 = vsyncpa [#allocation8], 0 }
   0x9   :  { %22 = vsyncpa [#allocation11], 0 }
   0xa   :  { %23 = vsyncpa [#allocation6], 0 }
   0xb   :  { %25 = vsyncpa [#allocation6 + $0x1], 0  ;;  %s2201_s18 = smov 0   ;;  %s2203_s19 = smov 0  }
   0xc   :  { %s2205_s20 = smov 0   ;;  %s2207_s21 = smov 0  }
   0xd   :  { %s2209_s22 = smov 0   ;;  %s2211_s23 = smov 0  }
   0xe LB: > { %2607 = sst [smem:[#allocation17_spill]] %s2080_s18  ;;  %s1576_s24 = sadd.s32 4294967295, %s2100_s23   ;;  %s2100_s23 = sphi %s2211_s23, %s31_s23   ;;  %s2096_s22 = sphi %s2209_s22, %s2641_s22   ;;  %s2092_s21 = sphi %s2207_s21, %s2640_s21   ;;  %s2088_s20 = sphi %s2205_s20, %s2639_s20   ;;  %s2084_s19 = sphi %s2203_s19, %s2638_s19   ;;  %s2080_s18 = sphi %s2201_s18, %s2637_s18  }
   0xf   : > { %2608 = sst [smem:[#allocation18_spill]] %s2084_s19  ;;  %s1577_s25 = sadd.s32 4294967294, %s2100_s23  }
  0x10   : > { %2609 = sst [smem:[#allocation19_spill]] %s2088_s20  ;;  %s43_s26 = sadd.s32 1, %s2096_s22 }
  0x11   : > { %2610 = sst [smem:[#allocation20_spill]] %s2096_s22  ;;  %s372_s27 = sadd.s32 1, %s2088_s20 }
  0x12   : > { %2611 = sst [smem:[#allocation21_spill]] %s2100_s23  ;;  %p45_p0 = scmp.ge.s32.totalorder %s43_s26, 2 }
  0x13   : > { %p382_p1 = scmp.ne.s32.totalorder %s2088_s20, %s2084_s19  ;;  %p383_p2 = scmp.eq.s32.totalorder %s1576_s24, 1 }
  0x14   : > { %p388_p3 = scmp.ne.s32.totalorder %s2084_s19, %s2080_s18  ;;  %s2643_s26 = smov (%p45_p0, %s43_s26), 0 }
  0x15   : > { %2612 = sst [smem:[#allocation22_spill]] %s2643_s26  ;;  %p2241_p4 = por %p383_p2, %p382_p1 }
  0x16   : > { %p389_p5 = scmp.eq.s32.totalorder %s1577_s25, 1  ;;  %s367_s29 = ssub.s32 %s2096_s22, %s2643_s26 }
  0x17   : > { %s2613_s28 = scalar_select %p2241_p4, 1, 0 }
  0x18   : > { %p1578_p6 = scmp.ge.s32.totalorder %s2100_s23, 1  ;;  %p370_p7 = scmp.eq.s32.totalorder %s367_s29, 0 }
  0x19   : > { %2614 = sst [smem:[#allocation23_spill]] %s2613_s28  ;;  %p2248_p8 = por %p389_p5, %p388_p3 }
  0x1a   : > { %p396_p9 = scmp.lt.s32.totalorder %s2100_s23, 3  ;;  %p2260_p11 = scmp.eq.s32.totalorder %s1576_s24, 0 }
  0x1b   : > { %s2615_s30 = scalar_select %p2248_p8, 1, 0 }
  0x1c   : > { %s2254_s16 = scalar_select %p370_p7, %s2088_s20, %s372_s27  }
  0x1d   : > { %2616 = sst [smem:[#allocation24_spill]] %s2615_s30  ;;  %p2256_p10 = pnand %p1578_p6, %p396_p9 }
  0x1e   : > { %2617 = sst [smem:[#allocation25_spill]] %s2254_s16  ;;  %s2102_s25 = smov [#allocation7]  }
  0x1f   : > { %s2618_s17 = scalar_select %p2256_p10, 1, 0 }
  0x20   : > { %s2619_s18 = scalar_select %p2260_p11, 1, 0 }
  0x21   : > { %p1773_p12 = pneg %p2256_p10  ;;  %s434_s29 = sshll.u32 %s2102_s25, 4  ;;  %s435_s29 = int_to_ptr.vmem [resolvable:$true] %s434_s29 }
  0x22   : > { %s2103_s27 = smov [#allocation4]   ;;  %s2621_s6 = sld [smem:[#allocation26_spill]] }
  0x23   : > { %p2268_p13 = pnand %p2260_p11, %p1773_p12  ;;  %s420_s22 = sshll.u32 %s2103_s27, 4  ;;  %s2272_s22 = int_to_ptr.vmem [resolvable:$true] %s420_s22 }
  0x25   : > { %p2282_p1 = pneg %p2268_p13 }
  0x28   : > { %s1898_s20 = scalar_lea.hbm %s2621_s6, 16 }
  0x29   : > { %p1899_p0 = scmp.ne.s32.totalorder %s2621_s6, %s1898_s20  ;;  %p1905_p5 = scmp.lt.u32.totalorder %s1898_s20, %s2621_s6 }
  0x2b   : > { %p1901_p2 = pnand %p2282_p1, %p1899_p0 }
  0x2d   : > { %p1902_p3 = pneg %p1901_p2 }
  0x2f   : > { %p1907_p6 = pnand %p1905_p5, %p1902_p3 }
  0x31   : > { %1910 = shalt.err (!%p1907_p6)
}
  0x32   : > { %s1911_s16 = scalar_lea.vmem %s435_s29, 16  ;;  %s1918_s23 = scalar_lea.vmem %s435_s29, 32 }
  0x33   : > { %p1912_p7 = scmp.ne.s32.totalorder %s435_s29, %s1911_s16  ;;  %p1919_p8 = scmp.lt.s32.totalorder %s435_s29, %s435_s29 }
  0x34   : > { %p1920_p4 = scmp.lt.s32.totalorder %s1918_s23, %s1911_s16 }
  0x35   : > { %p1914_p9 = pnand %p1912_p7, %p2282_p1 }
  0x36   : > { %p1921_p11 = por %p1920_p4, %p1919_p8 }
  0x37   : > { %p1915_p12 = pneg %p1914_p9 }
  0x39   : > { %p1922_p10 = pnand %p1921_p11, %p1915_p12 }
  0x3b   : > { %1925 = shalt.err (!%p1922_p10)
}
  0x3c   : > { %1779 = dma.hbm_to_vmem [thread:$0]  (!%p2268_p13), %s2621_s6, 16, %s435_s29, [#allocation8]  }
  0x3d   : > { %s1926_s27 = scalar_lea.hbm %s2575_s5, 256 }
  0x3e   : > { %p1927_p0 = scmp.ne.s32.totalorder %s2575_s5, %s1926_s27  ;;  %p1933_p8 = scmp.lt.u32.totalorder %s1926_s27, %s2575_s5 }
  0x40   : > { %p1929_p2 = pnand %p1927_p0, %p2282_p1 }
  0x42   : > { %p1930_p4 = pneg %p1929_p2 }
  0x44   : > { %p1935_p10 = pnand %p1933_p8, %p1930_p4 }
  0x46   : > { %1938 = shalt.err (!%p1935_p10)
}
  0x47   : > { %s1939_s29 = scalar_lea.vmem %s2272_s22, 256  ;;  %p1947_p6 = scmp.lt.s32.totalorder %s2272_s22, %s2272_s22 }
  0x48   : > { %p1940_p11 = scmp.ne.s32.totalorder %s2272_s22, %s1939_s29  ;;  %p1948_p7 = scmp.lt.s32.totalorder %s1939_s29, %s1939_s29 }
  0x4a   : > { %p1942_p3 = pnand %p1940_p11, %p2282_p1  ;;  %p1949_p9 = por %p1948_p7, %p1947_p6 }
  0x4c   : > { %p1943_p5 = pneg %p1942_p3 }
  0x4e   : > { %p1950_p12 = pnand %p1949_p9, %p1943_p5 }
  0x50   : > { %1953 = shalt.err (!%p1950_p12)
}
  0x51   : > { %s2104_s13 = smov 64   ;;  %s2105_s14 = smov 4  }
  0x52   : > { %1776 = dma.hbm_to_vmem [thread:$0]  (!%p2268_p13), %s2575_s5, 256, %s2272_s22, [#allocation5], %s2104_s13, %s2104_s13, %s2105_s14  }
  0x53   : > { %s2106_s15 = smov [#allocation9]   ;;  %s2107_s27 = smov [#allocation10]  }
  0x54   : > { %s445_s20 = sshll.u32 %s2106_s15, 4  ;;  %s456_s16 = sshll.u32 %s2107_s27, 4  ;;  %s446_s20 = int_to_ptr.vmem [resolvable:$true] %s445_s20  ;;  %s457_s16 = int_to_ptr.vmem [resolvable:$true] %s456_s16 }
  0x55   : > { %s1954_s6 = scalar_lea.hbm %s2577_s7, 16 }
  0x56   : > { %p1955_p0 = scmp.ne.s32.totalorder %s2577_s7, %s1954_s6  ;;  %p1961_p8 = scmp.lt.u32.totalorder %s1954_s6, %s2577_s7 }
  0x58   : > { %p1957_p2 = pnand %p1955_p0, %p2282_p1 }
  0x5a   : > { %p1958_p4 = pneg %p1957_p2 }
  0x5c   : > { %p1963_p10 = pnand %p1961_p8, %p1958_p4 }
  0x5e   : > { %1966 = shalt.err (!%p1963_p10)
}
  0x5f   : > { %s1967_s22 = scalar_lea.vmem %s446_s20, 16  ;;  %s1974_s13 = scalar_lea.vmem %s446_s20, 32 }
  0x60   : > { %p1968_p11 = scmp.ne.s32.totalorder %s446_s20, %s1967_s22  ;;  %p1975_p6 = scmp.lt.s32.totalorder %s446_s20, %s446_s20 }
  0x61   : > { %p1976_p7 = scmp.lt.s32.totalorder %s1974_s13, %s1967_s22 }
  0x62   : > { %p1970_p3 = pnand %p1968_p11, %p2282_p1 }
  0x63   : > { %p1977_p9 = por %p1976_p7, %p1975_p6 }
  0x64   : > { %p1971_p5 = pneg %p1970_p3 }
  0x66   : > { %p1978_p12 = pnand %p1977_p9, %p1971_p5 }
  0x68   : > { %1981 = shalt.err (!%p1978_p12)
}
  0x69   : > { %1782 = dma.hbm_to_vmem [thread:$0]  (!%p2268_p13), %s2577_s7, 16, %s446_s20, [#allocation8]  }
  0x6a   : > { %s1982_s12 = scalar_lea.hbm %s2578_s8, 16 }
  0x6b   : > { %p1983_p0 = scmp.ne.s32.totalorder %s2578_s8, %s1982_s12  ;;  %p1989_p8 = scmp.lt.u32.totalorder %s1982_s12, %s2578_s8 }
  0x6d   : > { %p1985_p2 = pnand %p1983_p0, %p2282_p1 }
  0x6f   : > { %p1986_p4 = pneg %p1985_p2 }
  0x71   : > { %p1991_p10 = pnand %p1989_p8, %p1986_p4 }
  0x73   : > { %1994 = shalt.err (!%p1991_p10)
}
  0x74   : > { %s1995_s27 = scalar_lea.vmem %s457_s16, 16  ;;  %s2002_s20 = scalar_lea.vmem %s457_s16, 32 }
  0x75   : > { %p1996_p11 = scmp.ne.s32.totalorder %s457_s16, %s1995_s27  ;;  %p2003_p6 = scmp.lt.s32.totalorder %s457_s16, %s457_s16 }
  0x76   : > { %p2004_p7 = scmp.lt.s32.totalorder %s2002_s20, %s1995_s27 }
  0x77   : > { %p1998_p3 = pnand %p1996_p11, %p2282_p1 }
  0x78   : > { %p2005_p9 = por %p2004_p7, %p2003_p6 }
  0x79   : > { %p1999_p5 = pneg %p1998_p3 }
  0x7b   : > { %p2006_p12 = pnand %p2005_p9, %p1999_p5 }
  0x7d   : > { %2009 = shalt.err (!%p2006_p12)
}
  0x7e   : > { %1785 = dma.hbm_to_vmem [thread:$0]  (!%p2268_p13), %s2578_s8, 16, %s457_s16, [#allocation11]  }
  0x7f   : > { %p2623_p0 = scmp.ne.s32.totalorder %s2618_s17, 0 }
  0x80   : > { %p2624_p2 = scmp.ne.s32.totalorder (!%p2623_p0), %s2619_s18, 0 }
  0x81   : > { %494 = sbr.rel (%p2623_p0) target bundleno = 2683 (0xa7b), region = 80 }
  0x88   : > { %2063 = dma.done.wait (%p2624_p2), [#allocation5], 256  }
  0x89   : > { %2065 = vsyncadd (%p2624_p2), [#allocation5], 4294967040 }
  0x8a   : > { %2067 = dma.done.wait (%p2624_p2), [#allocation8], 32  }
  0x8b   : > { %2069 = vsyncadd (%p2624_p2), [#allocation8], 4294967264 }
  0x8c   : > { %2071 = dma.done.wait (%p2624_p2), [#allocation11], 16  }
  0x8d   : > { %2073 = vsyncadd (%p2624_p2), [#allocation11], 4294967280  ;;  %p553_p13 = scmp.lt.s32.totalorder %s2092_s21, 1  ;;  %v2108_v0 = vmov 0.0   ;;  %vm2109_vm0 = vmmov 0   ;;  %v1865_v1 = vld [vmem:[%s2573_s3] sm:$0xff]  }
  0x8e   : > { %1663 = vmatprep.subr.bf16.mxu1 %v2108_v0  ;;  %1667 = vmatprep.mubr.msk.bf16.mxu1 %vm2109_vm0, %v2108_v0  ;;  %v1866_v2 = vld [vmem:[%s2573_s3 + $0x8] sm:$0xff]   ;;  %vm587_vm1 = vcmask 261120   ;;  %v1867_v4 = vld [vmem:[%s2571_s1] sm:$0xff]   ;;  %vm632_vm2 = vcmask 519168   ;;  %vm707_vm3 = vcmask 64512   ;;  %s2110_s20 = smov 112  }
  0x8f   : > { %s554_s26 = scalar_select %p553_p13, %s2092_s21, 1  ;;  %1679 = vmatprep.subr.bf16.mxu0 %v2108_v0  ;;  %1681 = vmatprep.mubr.msk.bf16.mxu0 %vm2109_vm0, %v2108_v0  ;;  %v1868_v6 = vld [vmem:[%s2571_s1 + $0x8] sm:$0xff]   ;;  %v1591_v7 = vld [vmem:[%s2574_s4] ss:$0 sm:$0xff]  ;;  %vm774_vm4 = vcmask 1043456   ;;  %vm1162_vm5 = vcmask 130048  }
  0x90   : > { %1664 = vmatpush3.bf16.msra.mxu1 %v1865_v1  ;;  %v1595_v14 = vld [vmem:[%s2572_s2] ss:$0 sm:$0xff]  ;;  %s2111_s23 = smov 120   ;;  %s2112_s29 = smov 104   ;;  %vm1164_vm6 = vcmask 195584   ;;  %vm1167_vm7 = vcmask 257024  }
  0x91   : > { %s1590_s17 = sshll.u32 %s554_s26, 3  ;;  %1665 = vmatprep.subr.bf16.mxu1 %v2108_v0  ;;  %s2113_s26 = smov 96   ;;  %vm1375_vm8 = vcmask 523264  }
  0x92   : > { %s556_s16 = scalar_lea.vmem %s2570_s0, %s1590_s17  ;;  %s2114_s17 = smov 80  }
  0x93   : > { %v2388_v3 = vld [vmem:[%s556_s16] sm:$0xff]  ;;  %s2115_s25 = smov 72   ;;  %s2116_s18 = smov 88  }
  0x94   : > { %v563_v5 = vpack.c.bf16 %v2388_v3, %v2388_v3  ;;  %1666 = vmatpush3.bf16.msra.mxu1 %v1866_v2  ;;  %s2117_s16 = smov 8   ;;  %s2118_s22 = smov 16  }
  0x95   : > { %1671 = vmatprep.subr.bf16.mxu1 %v2108_v0  ;;  %s2119_s13 = smov 24   ;;  %s2628_s28 = sld [smem:[#allocation23_spill]] }
  0x96   : > { %s2629_s12 = sld [smem:[#allocation29_spill]]  ;;  %s2630_s24 = sld [smem:[#allocation30_spill]] }
  0x97   : > { %1668 = vmatmul.mubr.msk.bf16.vlgmr.msra.gmra.mrb[0].mxu1 %vm587_vm1, %v563_v5  ;;  %s1627_s15 = sshll.u32 %s2092_s21, 7  ;;  %s2120_s21 = smov [#allocation12]  }
  0x98   : > { %1672 = vmatpush3.bf16.msra.mxu1 %v1867_v4  ;;  %1675 = vmatprep.mubr.msk.bf16.mxu1 %vm2109_vm0, %v2108_v0 }
  0x99   : > { %1673 = vmatprep.subr.bf16.mxu1 %v2108_v0 }
  0x9b   : > { %p2632_p4 = scmp.ne.s32.totalorder %s2628_s28, 0 }
  0x9c   : > { %1674 = vmatpush3.bf16.msra.mxu1 %v1868_v6 }
  0x9d   : > { %1685 = vmatprep.subr.bf16.mxu1 %v2108_v0 }
  0x9f   : > { %1676 = vmatmul.mubr.msk.bf16.vlgmr.msra.gmra.mrb[4].mxu1 %vm587_vm1, %v563_v5 }
  0xa0   : > { %1687 = vmatprep.mubr.msk.bf16.mxu1 %vm2109_vm0, %v2108_v0 }
 0x16a   : > { %v625_v8 = vpop.f32.mrb[0].mxu1 }
 0x16b   : > { %v626_v9 = vadd.f32 %v1591_v7, %v625_v8  ;;  %v1669_v10 = vpop.f32.mrb[1].mxu1 }
 0x16c   : > { %v628_v11 = vpop.f32.mrb[2].mxu1 }
 0x16d   : > { %v631_v12 = vpack.c.bf16 %v626_v9, %v626_v9  ;;  %v1670_v13 = vpop.f32.mrb[3].mxu1 }
 0x16f   : > { %633 = vst.msk [vmem:[#allocation2] sm:$0xf] %vm632_vm2, %v631_v12 }
 0x172   : > { %v699_v15 = vpop.f32.mrb[4].mxu1 }
 0x173   : > { %v1677_v16 = vpop.f32.mrb[5].mxu1  ;;  %v700_v18 = vadd.f32 %v1595_v14, %v699_v15 }
 0x174   : > { %v702_v17 = vpop.f32.mrb[6].mxu1 }
 0x175   : > { %v1678_v19 = vpop.f32.mrb[7].mxu1  ;;  %v705_v23 = vpack.c.bf16 %v700_v18, %v700_v18 }
 0x176   : > { %v706_v20 = vld [vmem:[#allocation2] sm:$0xf] }
 0x177   : > { %v712_v21 = vsel %vm707_vm3, %v706_v20, 0  ;;  %v2415_v22 = vcombine.low %v706_v20, %v706_v20 }
 0x178   : > { %1680 = vmatpush3.bf16.xpose.msra.mxu0 %v712_v21 }
 0x179   : > { %931 = vrot.lane.b32.xlu1 %v2415_v22, %s2110_s20  ;;  %821 = vrot.lane.b32.xlu0 %v2415_v22, %s2111_s23 }
 0x17a   : > { %1691 = vmatprep.subr.bf16.mxu0 %v2108_v0 }
 0x17d   : > { %929 = vrot.lane.b32.xlu1 %v705_v23, %s2110_s20  ;;  %819 = vrot.lane.b32.xlu0 %v705_v23, %s2111_s23 }
 0x17f   : > { %1682 = vmatmul.mubr.msk.bf16.vlgmr.msra.gmra.mrb[0].mxu0 %vm707_vm3, %v705_v23 }
 0x180   : > { %1693 = vmatprep.mubr.msk.bf16.mxu0 %vm2109_vm0, %v2108_v0 }
 0x181   : > { %1039 = vrot.lane.b32.xlu1 %v705_v23, %s2112_s29  ;;  %1041 = vrot.lane.b32.xlu0 %v2415_v22, %s2112_s29 }
 0x1eb   : > { %v822_v24 = vpop.permute.xlu0 %821  ;;  %v932_v26 = vpop.permute.xlu1 %931 }
 0x1ec   : > { %v827_v25 = vsel %vm707_vm3, %v822_v24, 0  ;;  %v937_v28 = vsel %vm707_vm3, %v932_v26, 0 }
 0x1ed   : > { %1692 = vmatpush3.bf16.xpose.msra.mxu0 %v827_v25 }
 0x1ee   : > { %1703 = vmatprep.subr.bf16.mxu0 %v2108_v0 }
 0x1ef   : > { %v820_v27 = vpop.permute.xlu0 %819  ;;  %v930_v30 = vpop.permute.xlu1 %929 }
 0x1f3   : > { %v1042_v29 = vpop.permute.xlu0 %1041  ;;  %v1040_v32 = vpop.permute.xlu1 %1039 }
 0x1f4   : > { %1694 = vmatmul.mubr.msk.bf16.vlgmr.msra.gmra.mrb[4].mxu0 %vm707_vm3, %v820_v27  ;;  %v1047_v31 = vsel %vm707_vm3, %v1042_v29, 0 }
 0x1f5   : > { %1704 = vmatpush3.bf16.xpose.msra.mxu0 %v937_v28  ;;  %1705 = vmatprep.mubr.msk.bf16.mxu0 %vm2109_vm0, %v2108_v0 }
 0x1f6   : > { %1715 = vmatprep.subr.bf16.mxu0 %v2108_v0 }
 0x1fc   : > { %1706 = vmatmul.mubr.msk.bf16.vlgmr.msra.gmra.mrb[8].mxu0 %vm707_vm3, %v930_v30 }
 0x1fd   : > { %1716 = vmatpush3.bf16.xpose.msra.mxu0 %v1047_v31  ;;  %1717 = vmatprep.mubr.msk.bf16.mxu0 %vm2109_vm0, %v2108_v0 }
 0x1fe   : > { %1727 = vmatprep.subr.bf16.mxu0 %v2108_v0 }
 0x204   : > { %1718 = vmatmul.mubr.msk.bf16.vlgmr.msra.gmra.mrb[12].mxu0 %vm707_vm3, %v1040_v32 }
 0x205   : > { %1731 = vmatprep.mubr.msk.bf16.mxu0 %vm2109_vm0, %v2108_v0 }
 0x252   : > { %v748_v33 = vpop.f32.mrb[0].mxu0 }
 0x253   : > { %v1683_v34 = vpop.f32.mrb[1].mxu0  ;;  %v754_v35 = vsel %vm707_vm3, %v748_v33, -inf }
 0x254   : > { %755 = vmax.xlane.f32.xlu0 %v754_v35  ;;  %v751_v36 = vpop.f32.mrb[2].mxu0 }
 0x255   : > { %v1684_v37 = vpop.f32.mrb[3].mxu0 }
 0x2c7   : > { %v863_v38 = vpop.f32.mrb[4].mxu0 }
 0x2c8   : > { %v1695_v39 = vpop.f32.mrb[5].mxu0  ;;  %v869_v40 = vsel %vm707_vm3, %v863_v38, -inf }
 0x2c9   : > { %870 = vmax.xlane.f32.xlu1 %v869_v40  ;;  %v866_v41 = vpop.f32.mrb[6].mxu0 }
 0x2ca   : > { %v1696_v42 = vpop.f32.mrb[7].mxu0 }
 0x2cf   : > { %v973_v43 = vpop.f32.mrb[8].mxu0 }
 0x2d0   : > { %v1707_v44 = vpop.f32.mrb[9].mxu0  ;;  %v979_v45 = vsel %vm707_vm3, %v973_v43, -inf }
 0x2d1   : > { %980 = vmax.xlane.f32.xlu0 %v979_v45  ;;  %v976_v46 = vpop.f32.mrb[10].mxu0 }
 0x2d2   : > { %v1708_v47 = vpop.f32.mrb[11].mxu0  ;;  %v1871_v46 = vld [vmem:[#allocation4 + $0x8] sm:$0xff]  }
 0x2d7   : > { %v1083_v48 = vpop.f32.mrb[12].mxu0 }
 0x2d8   : > { %v1719_v49 = vpop.f32.mrb[13].mxu0  ;;  %v1089_v50 = vsel %vm707_vm3, %v1083_v48, -inf }
 0x2d9   : > { %1090 = vmax.xlane.f32.xlu0 %v1089_v50  ;;  %v1086_v51 = vpop.f32.mrb[14].mxu0 }
 0x2da   : > { %v1720_v52 = vpop.f32.mrb[15].mxu0 }
 0x2e1   : > { %v756_v53 = vpop.xlane.xlu0 %755 }
 0x2e2   : > { %v757_v54 = vsub.f32 %v748_v33, %v756_v53 }
 0x2e4   : > { %v758_v55 = vmul.f32 1.442695, %v757_v54 }
 0x2e6   : > { %1878 = vpow2.f32 %v758_v55 }
 0x2f0   : > { %v1879_v56 = vpop.eup %1878 }
 0x2f1   : > { %v760_v57 = vsel %vm707_vm3, %v1879_v56, 0.0 }
 0x2f2   : > { %761 = vadd.xlane.f32.xlu1 %v760_v57 }
 0x303   : > { %769 = vrot.lane.b32.xlu1 %v2415_v22, %s2113_s26  ;;  %s2631_s26 = sld [smem:[#allocation31_spill]] }
 0x356   : > { %v871_v58 = vpop.xlane.xlu1 %870 }
 0x357   : > { %v872_v59 = vsub.f32 %v863_v38, %v871_v58 }
 0x359   : > { %v873_v60 = vmul.f32 1.442695, %v872_v59 }
 0x35b   : > { %1880 = vpow2.f32 %v873_v60 }
 0x35e   : > { %v981_v61 = vpop.xlane.xlu0 %980 }
 0x35f   : > { %v982_v62 = vsub.f32 %v973_v43, %v981_v61  ;;  %v1870_v43 = vld [vmem:[#allocation4] sm:$0xff]   ;;  %v1608_v61 = vld [vmem:[#allocation7] ss:$0 sm:$0xff] }
 0x360   : > { %1728 = vmatpush3.bf16.msra.mxu0 %v1870_v43 }
 0x361   : > { %v983_v63 = vmul.f32 1.442695, %v982_v62  ;;  %1729 = vmatprep.subr.bf16.mxu0 %v2108_v0 }
 0x363   : > { %1882 = vpow2.f32 %v983_v63 }
 0x364   : > { %1730 = vmatpush3.bf16.msra.mxu0 %v1871_v46 }
 0x365   : > { %v1881_v1 = vpop.eup %1880  ;;  %1743 = vmatprep.subr.bf16.mxu0 %v2108_v0 }
 0x366   : > { %v1091_v2 = vpop.xlane.xlu0 %1090  ;;  %v875_v4 = vsel %vm707_vm3, %v1881_v1, 0.0 }
 0x367   : > { %v1092_v5 = vsub.f32 %v1083_v48, %v1091_v2  ;;  %876 = vadd.xlane.f32.xlu0 %v875_v4 }
 0x369   : > { %v1093_v6 = vmul.f32 1.442695, %v1092_v5 }
 0x36b   : > { %1884 = vpow2.f32 %v1093_v6 }
 0x36d   : > { %v1883_v7 = vpop.eup %1882 }
 0x36e   : > { %v985_v8 = vsel %vm707_vm3, %v1883_v7, 0.0 }
 0x36f   : > { %986 = vadd.xlane.f32.xlu1 %v985_v8 }
 0x375   : > { %v1885_v9 = vpop.eup %1884 }
 0x376   : > { %v1095_v10 = vsel %vm707_vm3, %v1885_v9, 0.0 }
 0x377   : > { %1096 = vadd.xlane.f32.xlu0 %v1095_v10 }
 0x37f   : > { %v762_v11 = vpop.xlane.xlu1 %761 }
 0x380   : > { %1886 = vrcp.f32 %v762_v11  ;;  %991 = vrot.lane.b32.xlu1 %v2415_v22, %s2114_s17  ;;  %s2625_s17 = sld [smem:[#allocation27_spill]] }
 0x383   : > { %v770_v12 = vpop.permute.xlu1 %769 }
 0x384   : > { %v776_v13 = vsel %vm774_vm4, %v770_v12, 0  ;;  %1101 = vrot.lane.b32.xlu1 %v2415_v22, %s2115_s25  ;;  %v1872_v12 = vld [vmem:[%s2579_s9] sm:$0xff]  }
 0x385   : > { %1686 = vmatpush3.bf16.msra.mxu1 %v776_v13  ;;  %v1873_v13 = vld [vmem:[%s2579_s9 + $0x8] sm:$0xff]  }
 0x386   : > { %1697 = vmatprep.subr.bf16.mxu1 %v2108_v0 }
 0x38a   : > { %v1887_v14 = vpop.eup %1886 }
 0x38b   : > { %v764_v15 = vmul.f32 %v1887_v14, %v1879_v56  ;;  %v1875_v14 = vld [vmem:[%s2581_s11 + $0x8] sm:$0xff]  }
 0x38d   : > { %881 = vrot.lane.b32.xlu0 %v2415_v22, %s2116_s18  ;;  %v765_v16 = vpack.c.bf16 %v764_v15, %v764_v15 }
 0x38f   : > { %1688 = vmatmul.mubr.msk.bf16.vlgmr.msra.gmra.mrb[8].mxu1 %vm707_vm3, %v765_v16 }
 0x390   : > { %1699 = vmatprep.mubr.msk.bf16.mxu1 %vm2109_vm0, %v2108_v0 }
 0x3f4   : > { %v877_v17 = vpop.xlane.xlu0 %876 }
 0x3f5   : > { %1888 = vrcp.f32 %v877_v17 }
 0x3fc   : > { %v987_v18 = vpop.xlane.xlu1 %986 }
 0x3fd   : > { %1890 = vrcp.f32 %v987_v18 }
 0x3ff   : > { %v1889_v19 = vpop.eup %1888 }
 0x400   : > { %v879_v21 = vmul.f32 %v1889_v19, %v1881_v1  ;;  %v992_v25 = vpop.permute.xlu1 %991  ;;  %v1612_v19 = vld [vmem:[#allocation9] ss:$0 sm:$0xff] }
 0x401   : > { %v997_v27 = vsel %vm774_vm4, %v992_v25, 0 }
 0x402   : > { %v880_v22 = vpack.c.bf16 %v879_v21, %v879_v21  ;;  %v1613_v21 = vld [vmem:[#allocation10] ss:$0 sm:$0xff] }
 0x404   : > { %v1097_v20 = vpop.xlane.xlu0 %1096  ;;  %v1102_v29 = vpop.permute.xlu1 %1101 }
 0x405   : > { %1892 = vrcp.f32 %v1097_v20  ;;  %v1107_v32 = vsel %vm774_vm4, %v1102_v29, 0 }
 0x407   : > { %v1891_v26 = vpop.eup %1890 }
 0x408   : > { %v882_v23 = vpop.permute.xlu0 %881  ;;  %v989_v28 = vmul.f32 %v1891_v26, %v1883_v7  ;;  %v1877_v26 = vld [vmem:[%s2581_s11 + $0x18] sm:$0xff]  }
 0x409   : > { %v887_v24 = vsel %vm774_vm4, %v882_v23, 0 }
 0x40a   : > { %1698 = vmatpush3.bf16.msra.mxu1 %v887_v24  ;;  %v990_v30 = vpack.c.bf16 %v989_v28, %v989_v28 }
 0x40b   : > { %1709 = vmatprep.subr.bf16.mxu1 %v2108_v0 }
 0x40d   : > { %1700 = vmatmul.mubr.msk.bf16.vlgmr.msra.gmra.mrb[12].mxu1 %vm707_vm3, %v880_v22  ;;  %v1876_v22 = vld [vmem:[%s2581_s11 + $0x10] sm:$0xff]  }
 0x40e   : > { %1710 = vmatpush3.bf16.msra.mxu1 %v997_v27  ;;  %1711 = vmatprep.mubr.msk.bf16.mxu1 %vm2109_vm0, %v2108_v0  ;;  %v1614_v27 = vld [vmem:[%s2625_s17] ss:$0 sm:$0xff]  ;;  %s2522_s17 = scalar_lea.hbm %s2631_s26, %s1627_s15 }
 0x40f   : > { %1721 = vmatprep.subr.bf16.mxu1 %v2108_v0  ;;  %v1893_v31 = vpop.eup %1892 }
 0x410   : > { %v1099_v33 = vmul.f32 %v1893_v31, %v1885_v9 }
 0x412   : > { %v1100_v34 = vpack.c.bf16 %v1099_v33, %v1099_v33 }
 0x415   : > { %1712 = vmatmul.mubr.msk.bf16.vlgmr.msra.gmra.mrb[16].mxu1 %vm707_vm3, %v990_v30 }
 0x416   : > { %1722 = vmatpush3.bf16.msra.mxu1 %v1107_v32  ;;  %1723 = vmatprep.mubr.msk.bf16.mxu1 %vm2109_vm0, %v2108_v0 }
 0x417   : > { %1735 = vmatprep.subr.bf16.mxu1 %v2108_v0 }
 0x41d   : > { %1724 = vmatmul.mubr.msk.bf16.vlgmr.msra.gmra.mrb[20].mxu1 %vm707_vm3, %v1100_v34 }
 0x41e   : > { %1739 = vmatprep.mubr.msk.bf16.mxu1 %vm2109_vm0, %v2108_v0  ;;  %1736 = vmatpush3.bf16.msra.mxu1 %v1872_v12 }
 0x41f   : > { %1737 = vmatprep.subr.bf16.mxu1 %v2108_v0 }
 0x422   : > { %1738 = vmatpush3.bf16.msra.mxu1 %v1873_v13 }
 0x462   : > { %v812_v35 = vpop.f32.mrb[8].mxu1 }
 0x463   : > { %v1689_v36 = vpop.f32.mrb[9].mxu1 }
 0x464   : > { %v815_v37 = vpop.f32.mrb[10].mxu1 }
 0x465   : > { %v1690_v38 = vpop.f32.mrb[11].mxu1 }
 0x4e0   : > { %v923_v39 = vpop.f32.mrb[12].mxu1 }
 0x4e1   : > { %1150 = vrot.lane.b32.xlu0 %v923_v39, %s2117_s16  ;;  %v1701_v40 = vpop.f32.mrb[13].mxu1  ;;  %s2626_s16 = sld [smem:[#allocation28_spill]] }
 0x4e2   : > { %v926_v41 = vpop.f32.mrb[14].mxu1 }
 0x4e3   : > { %v1702_v42 = vpop.f32.mrb[15].mxu1 }
 0x4e8   : > { %v1033_v44 = vpop.f32.mrb[16].mxu1 }
 0x4e9   : > { %1154 = vrot.lane.b32.xlu1 %v1033_v44, %s2118_s22  ;;  %v1713_v45 = vpop.f32.mrb[17].mxu1  ;;  %s2627_s22 = sld [smem:[#allocation18_spill]] }
 0x4ea   : > { %v1036_v47 = vpop.f32.mrb[18].mxu1 }
 0x4eb   : > { %v1714_v48 = vpop.f32.mrb[19].mxu1 }
 0x4f0   : > { %v1143_v49 = vpop.f32.mrb[20].mxu1 }
 0x4f1   : > { %1158 = vrot.lane.b32.xlu0 %v1143_v49, %s2119_s13  ;;  %v1725_v50 = vpop.f32.mrb[21].mxu1  ;;  %s550_s13 = sand.u32 1, %s2627_s22  }
 0x4f2   : > { %v1146_v51 = vpop.f32.mrb[22].mxu1  ;;  %s1589_s19 = sshll.u32 %s550_s13, 3  ;;  %s1451_s25 = scalar_lea.sflag [#allocation6], %s550_s13 }
 0x4f3   : > { %v1726_v52 = vpop.f32.mrb[23].mxu1  ;;  %v1624_v51 = vld [vmem:[%s2629_s12] ss:$0 sm:$0xff]  ;;  %s552_s27 = scalar_lea.vmem [#allocation12], %s1589_s19 }
 0x4f4   : > { %s1465_s20 = sshll.u32 %s552_s27, 4  ;;  %s2524_s20 = int_to_ptr.vmem [resolvable:$true] %s1465_s20 }
 0x4f5   : > { %s2010_s18 = scalar_lea.vmem %s2524_s20, 128 }
 0x4f6   : > { %p2011_p1 = scmp.ne.s32.totalorder %s2524_s20, %s2010_s18 }
 0x4f8   : > { %p2012_p8 = pnand %p2011_p1, %p2632_p4 }
 0x4fa   : > { %p2013_p10 = pneg %p2012_p8 }
 0x553   : > { %v1151_v53 = vpop.permute.xlu0 %1150 }
 0x554   : > { %v1161_v55 = vsel %vm707_vm3, %v812_v35, %v1151_v53  ;;  %v1625_v53 = vld [vmem:[%s2630_s24] ss:$0 sm:$0xff] }
 0x55b   : > { %v1155_v54 = vpop.permute.xlu1 %1154 }
 0x55c   : > { %v1163_v56 = vsel %vm1162_vm5, %v1161_v55, %v1155_v54 }
 0x563   : > { %v1159_v57 = vpop.permute.xlu0 %1158 }
 0x564   : > { %v1165_v58 = vsel %vm1164_vm6, %v1163_v56, %v1159_v57 }
 0x565   : > { %v1166_v59 = vpack.c.bf16 %v1165_v58, %v1165_v58 }
 0x567   : > { %1168 = vst.msk [vmem:[#allocation3] sm:$0xf] %vm1167_vm7, %v1166_v59 }
 0x56e   : > { %v1169_v60 = vld [vmem:[#allocation3] sm:$0xf] }
 0x56f   : > { %1732 = vmatmul.mubr.msk.bf16.vlgmr.msra.gmra.mrb[16].mxu0 %vm587_vm1, %v1169_v60 }
 0x570   : > { %1751 = vmatprep.mubr.msk.bf16.mxu0 %vm2109_vm0, %v2108_v0 }
 0x642   : > { %v1230_v62 = vpop.f32.mrb[16].mxu0 }
 0x643   : > { %v1231_v63 = vadd.f32 %v1608_v61, %v1230_v62  ;;  %v1733_v1 = vpop.f32.mrb[17].mxu0 }
 0x644   : > { %v1233_v2 = vpop.f32.mrb[18].mxu0 }
 0x645   : > { %v1734_v4 = vpop.f32.mrb[19].mxu0  ;;  %v1236_v5 = vadd.f32 %v1231_v63, %v2388_v3  ;;  %v1874_v3 = vld [vmem:[%s2581_s11] sm:$0xff]  }
 0x646   : > { %1744 = vmatpush3.bf16.msra.mxu0 %v1874_v3 }
 0x647   : > { %v1239_v6 = vsel %vm587_vm1, %v1236_v5, 0.0  ;;  %1745 = vmatprep.subr.bf16.mxu0 %v2108_v0 }
 0x648   : > { %1240 = vadd.xlane.f32.xlu1 %v1239_v6 }
 0x64a   : > { %1746 = vmatpush3.bf16.msra.mxu0 %v1875_v14 }
 0x64b   : > { %1747 = vmatprep.subr.bf16.mxu0 %v2108_v0 }
 0x64e   : > { %1748 = vmatpush3.bf16.msra.mxu0 %v1876_v22 }
 0x64f   : > { %1749 = vmatprep.subr.bf16.mxu0 %v2108_v0  ;;  %v1618_v0 = vld [vmem:[%s2626_s16] ss:$0 sm:$0xff]  ;;  %s2014_s16 = sshll.u32 %s2120_s21, 4  ;;  %s2015_s16 = int_to_ptr.vmem [resolvable:$false] %s2014_s16 }
 0x650   : > { %s2016_s22 = scalar_lea.vmem %s2015_s16, 256  ;;  %p2017_p11 = scmp.lt.s32.totalorder %s2524_s20, %s2015_s16 }
 0x651   : > { %p2018_p3 = scmp.lt.s32.totalorder %s2016_s22, %s2010_s18 }
 0x652   : > { %1750 = vmatpush3.bf16.msra.mxu0 %v1877_v26 }
 0x653   : > { %p2019_p5 = por %p2018_p3, %p2017_p11 }
 0x655   : > { %p2020_p6 = pnand %p2019_p5, %p2013_p10 }
 0x6d5   : > { %v1241_v7 = vpop.xlane.xlu1 %1240 }
 0x6d6   : > { %v1243_v8 = vmul.f32 0.03125, %v1241_v7 }
 0x6d8   : > { %v1244_v9 = vsub.f32 %v1236_v5, %v1243_v8 }
 0x6da   : > { %v1245_v10 = vmul.f32 %v1244_v9, %v1244_v9 }
 0x6dc   : > { %v1246_v11 = vsel %vm587_vm1, %v1245_v10, 0.0 }
 0x6dd   : > { %1247 = vadd.xlane.f32.xlu0 %v1246_v11 }
 0x76a   : > { %v1248_v15 = vpop.xlane.xlu0 %1247 }
 0x76b   : > { %v1249_v16 = vmul.f32 0.03125, %v1248_v15 }
 0x76d   : > { %v1250_v17 = vadd.f32 1e-05, %v1249_v16 }
 0x76f   : > { %1894 = vrsqrt.f32 %v1250_v17 }
 0x779   : > { %v1895_v18 = vpop.eup %1894 }
 0x77a   : > { %v1252_v20 = vmul.f32 %v1895_v18, %v1244_v9 }
 0x77c   : > { %v1259_v23 = vmul.f32 %v1612_v19, %v1252_v20 }
 0x77e   : > { %v1266_v24 = vadd.f32 %v1613_v21, %v1259_v23 }
 0x780   : > { %v1267_v25 = vpack.c.bf16 %v1266_v24, %v1266_v24 }
 0x782   : > { %1740 = vmatmul.mubr.msk.bf16.vlgmr.msra.gmra.mrb[24].mxu1 %vm587_vm1, %v1267_v25 }
 0x855   : > { %v1328_v28 = vpop.f32.mrb[24].mxu1 }
 0x856   : > { %v1329_v29 = vadd.f32 %v1614_v27, %v1328_v28  ;;  %v1741_v30 = vpop.f32.mrb[25].mxu1 }
 0x857   : > { %v1331_v31 = vpop.f32.mrb[26].mxu1 }
 0x858   : > { %v1334_v32 = vmax.f32 %v1329_v29, 0.0  ;;  %v1742_v33 = vpop.f32.mrb[27].mxu1 }
 0x85a   : > { %v1335_v34 = vpack.c.bf16 %v1334_v32, %v1334_v32 }
 0x85c   : > { %1752 = vmatmul.mubr.msk.bf16.vlgmr.msra.gmra.mrb[20].mxu0 %vm1375_vm8, %v1335_v34 }
 0x92f   : > { %v1413_v35 = vpop.f32.mrb[20].mxu0 }
 0x930   : > { %v1414_v36 = vadd.f32 %v1618_v0, %v1413_v35  ;;  %v1753_v37 = vpop.f32.mrb[21].mxu0 }
 0x931   : > { %v1416_v38 = vpop.f32.mrb[22].mxu0 }
 0x932   : > { %v1754_v39 = vpop.f32.mrb[23].mxu0  ;;  %v1419_v40 = vadd.f32 %v1414_v36, %v1266_v24 }
 0x934   : > { %v1422_v41 = vsel %vm587_vm1, %v1419_v40, 0.0 }
 0x935   : > { %1423 = vadd.xlane.f32.xlu0 %v1422_v41 }
 0x9c2   : > { %v1424_v42 = vpop.xlane.xlu0 %1423 }
 0x9c3   : > { %v1425_v43 = vmul.f32 0.03125, %v1424_v42 }
 0x9c5   : > { %v1426_v44 = vsub.f32 %v1419_v40, %v1425_v43 }
 0x9c7   : > { %v1427_v45 = vmul.f32 %v1426_v44, %v1426_v44 }
 0x9c9   : > { %v1428_v46 = vsel %vm587_vm1, %v1427_v45, 0.0 }
 0x9ca   : > { %1429 = vadd.xlane.f32.xlu1 %v1428_v46 }
 0xa57   : > { %v1430_v47 = vpop.xlane.xlu1 %1429 }
 0xa58   : > { %v1431_v48 = vmul.f32 0.03125, %v1430_v47 }
 0xa5a   : > { %v1432_v49 = vadd.f32 1e-05, %v1431_v48 }
 0xa5c   : > { %1896 = vrsqrt.f32 %v1432_v49 }
 0xa66   : > { %v1897_v50 = vpop.eup %1896 }
 0xa67   : > { %v1434_v52 = vmul.f32 %v1897_v50, %v1426_v44 }
 0xa69   : > { %v1441_v54 = vmul.f32 %v1624_v51, %v1434_v52 }
 0xa6b   : > { %v1448_v55 = vadd.f32 %v1625_v53, %v1441_v54 }
 0xa6d   : > { %1449 = vst.msk [vmem:[%s552_s27] sm:$0xff] %vm587_vm1, %v1448_v55 }
 0xa6e   : > { %2023 = shalt.err (!%p2020_p6)
}
 0xa6f   : > { %s2024_s13 = scalar_lea.hbm %s2522_s17, 128  ;;  %s2028_s10 = scalar_lea.hbm %s2631_s26, 256 }
 0xa70   : > { %p2025_p7 = scmp.ne.s32.totalorder %s2522_s17, %s2024_s13  ;;  %p2029_p0 = scmp.lt.u32.totalorder %s2522_s17, %s2631_s26 }
 0xa71   : > { %p2030_p2 = scmp.lt.u32.totalorder %s2028_s10, %s2024_s13  ;;  %p2032_p1 = scmp.lt.u32.totalorder %s2024_s13, %s2522_s17 }
 0xa72   : > { %p2026_p9 = pnand %p2025_p7, %p2632_p4 }
 0xa73   : > { %p2031_p13 = por %p2030_p2, %p2029_p0 }
 0xa74   : > { %p2027_p12 = pneg %p2026_p9 }
 0xa75   : > { %p2033_p8 = por %p2032_p1, %p2031_p13 }
 0xa77   : > { %p2034_p10 = pnand %p2033_p8, %p2027_p12 }
 0xa79   : > { %2037 = shalt.err (!%p2034_p10)
}
 0xa7a   : > { %1771 = dma.vmem_to_hbm [thread:$0]  (%p2632_p4), %s2524_s20, 128, %s2522_s17, %s1451_s25  }
 0xa7b PF: > { %s2633_s30 = sld [smem:[#allocation21_spill]]  ;;  %s2634_s24 = sld [smem:[#allocation17_spill]] }
 0xa7c   : > { %s2635_s15 = sld [smem:[#allocation24_spill]] }
 0xa81   : > { %p1798_p11 = scmp.ge.s32.totalorder %s2633_s30, 2  ;;  %s1477_s27 = sand.u32 1, %s2634_s24  }
 0xa82   : > { %p2636_p3 = scmp.ne.s32.totalorder %s2635_s15, 0  ;;  %s1478_s23 = scalar_lea.sflag [#allocation6], %s1477_s27 }
 0xa84   : > { %p1787_p5 = pnand %p1798_p11, %p2636_p3 }
 0xa86   : > { %2075 = dma.done.wait (!%p1787_p5), %s1478_s23, 128  }
 0xa87   : > { %2077 = vsyncadd (!%p1787_p5), %s1478_s23, 4294967168  ;;  %s31_s23 = sadd.s32 1, %s2633_s30   ;;  %s2637_s18 = sld [smem:[#allocation18_spill]] }
 0xa88   : > { %p28_p6 = scmp.ge.s32.totalorder %s31_s23, 4   ;;  %s2638_s19 = sld [smem:[#allocation19_spill]] }
 0xa89   : > { %s2639_s20 = sld [smem:[#allocation25_spill]]  ;;  %s2640_s21 = sld [smem:[#allocation20_spill]] }
 0xa8a   : > { %s2641_s22 = sld [smem:[#allocation22_spill]]  ;;  %30 = sbr.rel (!%p28_p6) target bundleno = 14 (0xe), region = 137 }
 0xa91   :  { %1483 = vsyncpa [#allocation5], 1 }
 0xa92   :  { %1485 = vsyncpa [#allocation5 + $0x1], 1 }
 0xa93   :  { %1486 = vsyncpa [#allocation8], 1 }
 0xa94   :  { %1487 = vsyncpa [#allocation11], 1 }
 0xa95   :  { %1488 = vsyncpa [#allocation6], 1 }
 0xa96   :  { %1490 = vsyncpa [#allocation6 + $0x1], 1 }

</bundles_post_ra>
